<compile_context>
chip_gen: v6e
topology: v6e:2x2x1
jax: 0.10.0
libtpu: 0.0.40
codegen_flags: <defaults>
</compile_context>

<pallas_src>
import numpy as np
import jax
import jax.numpy as jnp
from jax.experimental import pallas as pl
from jax.experimental.pallas import tpu as pltpu


def _pe2d_kernel(pos_x_ref, xmul_ref, cadd_ref, o_ref):
    """One (TX, Y*C) tile of the positional encoding.

    pos_x_ref : (TX, 1)  f32  x coordinate of each row of this tile
    xmul_ref  : (1, YC)  f32  per-column multiplier (inv_freq on x-half cols, 0 on y-half)
    cadd_ref  : (1, YC)  f32  per-column phase (y*inv_freq on y-half cols, +pi/2 on "cos" cols)
    o_ref     : (TX, YC) out  lane-dense encoding tile, flattened over (y, c)
    """
    phase = pos_x_ref[...] * xmul_ref[...] + cadd_ref[...]
    o_ref[...] = jnp.sin(phase).astype(o_ref.dtype)


def _choose_tile_x(X, YC, out_itemsize, block_budget_bytes):
    """Pick TX: large enough to amortize per-step overhead, rounded to the
    dtype's sublane packing, and split so the parallel axis has >=2 steps
    (keeps both v7x TensorCores busy) when X permits."""
    sub = 8 * max(1, 4 // max(1, out_itemsize))      # f32:8, bf16:16, int8/fp8:32
    row_bytes = YC * 4                               # f32 compute row dominates
    rows = max(sub, (int(block_budget_bytes // max(row_bytes, 1)) // sub) * sub)
    tx = min(X, rows)
    if tx >= X and X >= 2 * sub:                     # would collapse grid to 1 step
        tx = ((X + 1) // 2 + sub - 1) // sub * sub   # ~X/2, rounded to packing
    return max(1, min(tx, X))


def positional_encoding_2d(x, *, block_budget_bytes=8 << 20):
    """Pallas equivalent of PositionalEncoding2D(org_channels).forward(x)."""
    B, X, Y, C = x.shape
    channels = int(np.ceil(C / 4) * 2)
    YC = Y * C
    itemsize = jnp.dtype(x.dtype).itemsize

    # ---- O(Y*C) column-invariant setup (exact integer index math) -----------
    j = np.arange(YC, dtype=np.int64)
    y_idx = j // C                                   # y coordinate of column
    c_idx = j % C                                    # channel within pixel
    is_x_half = c_idx < channels                     # [0, channels) -> x encoding
    ch = np.where(is_x_half, c_idx, c_idx - channels)
    pair = ch // 2
    use_cos = (ch % 2) == 1                          # odd channel -> cos
    inv_freq = 1.0 / (10000.0 ** (2.0 * pair / channels))
    xmul_np = np.where(is_x_half, inv_freq, 0.0)
    cadd_np = (np.where(is_x_half, 0.0, y_idx * inv_freq)
               + np.where(use_cos, np.pi / 2.0, 0.0))  # cos(p) = sin(p + pi/2)

    pos_x = jnp.arange(X, dtype=jnp.float32).reshape(X, 1)
    xmul = jnp.asarray(xmul_np.reshape(1, YC), dtype=jnp.float32)
    cadd = jnp.asarray(cadd_np.reshape(1, YC), dtype=jnp.float32)

    # ---- tiling / VMEM budget ------------------------------------------------
    TX = _choose_tile_x(X, YC, itemsize, block_budget_bytes)
    grid = (pl.cdiv(X, TX),)

    out_block_bytes = TX * YC * itemsize
    f32_block_bytes = TX * YC * 4
    footprint = (2 * out_block_bytes        # double-buffered output block
                 + 3 * f32_block_bytes      # in-kernel f32 temporaries
                 + 2 * (2 * YC * 4)         # xmul / cadd (double-buffered)
                 + 2 * TX * 4)              # pos_x block
    vmem_limit = int(min(48 << 20, max(4 << 20, 2 * footprint)))

    emb_flat = pl.pallas_call(
        _pe2d_kernel,
        out_shape=jax.ShapeDtypeStruct((X, YC), x.dtype),
        grid=grid,
        in_specs=[
            pl.BlockSpec((TX, 1), lambda i: (i, 0)),
            pl.BlockSpec((1, YC), lambda i: (0, 0)),
            pl.BlockSpec((1, YC), lambda i: (0, 0)),
        ],
        out_specs=pl.BlockSpec((TX, YC), lambda i: (i, 0)),
        compiler_params=pltpu.CompilerParams(
            dimension_semantics=("parallel",),
            vmem_limit_bytes=vmem_limit,
        ),
    )(pos_x, xmul, cadd)

    # Free row-major reshape back to (X, Y, C); batch replication is a pure
    # broadcast (the review's biggest win: do not write B identical slabs).
    emb = emb_flat.reshape(X, Y, C)
    return jnp.broadcast_to(emb[None], (B, X, Y, C))


def _reference(x):
    """Pure-numpy reimplementation of the PyTorch forward for verification."""
    B, X, Y, C = x.shape
    channels = int(np.ceil(C / 4) * 2)
    inv_freq = 1.0 / (10000.0 ** (np.arange(0, channels, 2, dtype=np.float64) / channels))
    pos_x = np.arange(X, dtype=np.float64)
    pos_y = np.arange(Y, dtype=np.float64)
    sin_inp_x = np.einsum("i,j->ij", pos_x, inv_freq)
    sin_inp_y = np.einsum("i,j->ij", pos_y, inv_freq)
    emb_x = np.stack([np.sin(sin_inp_x), np.cos(sin_inp_x)], -1).reshape(X, channels)
    emb_y = np.stack([np.sin(sin_inp_y), np.cos(sin_inp_y)], -1).reshape(Y, channels)
    emb = np.zeros((X, Y, 2 * channels), dtype=np.float64)
    emb[:, :, :channels] = emb_x[:, None, :]
    emb[:, :, channels:] = emb_y[None, :, :]
    return np.broadcast_to(emb[None, :, :, :C], (B, X, Y, C)).astype(np.asarray(x).dtype)


if __name__ == "__main__":
    key = jax.random.PRNGKey(0)
    # (batch, x, y, ch) — the forward only consumes the input's shape/dtype.
    test_shapes = [(2, 16, 16, 8),   # C a multiple of 4 (no truncation)
                   (2, 16, 8, 6)]    # C not a multiple of 4 (exercises [:C] truncation)
    for shape in test_shapes:
        x = jax.random.normal(key, shape, dtype=jnp.float32)
        out = jax.block_until_ready(positional_encoding_2d(x))
        assert out.shape == shape and out.dtype == x.dtype
        np.testing.assert_allclose(np.asarray(out), _reference(x), rtol=2e-4, atol=2e-4)
    print("KERNEL_OK")
</pallas_src>

<mosaic_0001>
module attributes {stable_mosaic.version = 11 : i64} {
  func.func @_pe2d_kernel(%arg0: i32, %arg1: memref<8x1xf32, #tpu.memory_space<vmem>>, %arg2: memref<1x128xf32, #tpu.memory_space<vmem>>, %arg3: memref<1x128xf32, #tpu.memory_space<vmem>>, %arg4: memref<8x128xf32, #tpu.memory_space<vmem>>) attributes {dimension_semantics = [#tpu.dimension_semantics<parallel>], iteration_bounds = array<i64: 2>, scalar_prefetch = 0 : i64, scratch_operands = 0 : i64, tpu.core_type = #tpu.core_type<tc>, window_params = [{transform_indices = @transform_0, window_bounds = array<i64: 8, 1>}, {pipeline_mode = #tpu.pipeline_mode<synchronous>, transform_indices = @transform_1, window_bounds = array<i64: 1, 128>}, {pipeline_mode = #tpu.pipeline_mode<synchronous>, transform_indices = @transform_2, window_bounds = array<i64: 1, 128>}, {transform_indices = @transform_3, window_bounds = array<i64: 8, 128>}]} {
    %c0 = arith.constant 0 : index
    %c0_0 = arith.constant 0 : index
    %0 = vector.load %arg1[%c0, %c0_0] : memref<8x1xf32, #tpu.memory_space<vmem>>, vector<8x1xf32>
    %c0_1 = arith.constant 0 : index
    %c0_2 = arith.constant 0 : index
    %1 = vector.load %arg2[%c0_1, %c0_2] : memref<1x128xf32, #tpu.memory_space<vmem>>, vector<1x128xf32>
    %2 = vector.broadcast %0 : vector<8x1xf32> to vector<8x128xf32>
    %3 = vector.broadcast %1 : vector<1x128xf32> to vector<8x128xf32>
    %4 = arith.mulf %2, %3 : vector<8x128xf32>
    %c0_3 = arith.constant 0 : index
    %c0_4 = arith.constant 0 : index
    %5 = vector.load %arg3[%c0_3, %c0_4] : memref<1x128xf32, #tpu.memory_space<vmem>>, vector<1x128xf32>
    %6 = vector.broadcast %5 : vector<1x128xf32> to vector<8x128xf32>
    %7 = arith.addf %4, %6 : vector<8x128xf32>
    %8 = math.sin %7 : vector<8x128xf32>
    %c0_5 = arith.constant 0 : index
    %c0_6 = arith.constant 0 : index
    %9 = vector.load %arg4[%c0_5, %c0_6] : memref<8x128xf32, #tpu.memory_space<vmem>>, vector<8x128xf32>
    tpu.vector_store %arg4[%c0_5, %c0_6], %8 {strides = array<i32>} : memref<8x128xf32, #tpu.memory_space<vmem>>, vector<8x128xf32>,
    return
  }
  func.func @transform_0(%arg0: i32) -> (i32, i32) {
    %c0_i32 = arith.constant 0 : i32
    %c0_i32_0 = arith.constant 0 : i32
    return %arg0, %c0_i32 : i32, i32
  }
  func.func @transform_1(%arg0: i32) -> (i32, i32) {
    %c0_i32 = arith.constant 0 : i32
    %c0_i32_0 = arith.constant 0 : i32
    %c0_i32_1 = arith.constant 0 : i32
    return %c0_i32, %c0_i32_0 : i32, i32
  }
  func.func @transform_2(%arg0: i32) -> (i32, i32) {
    %c0_i32 = arith.constant 0 : i32
    %c0_i32_0 = arith.constant 0 : i32
    %c0_i32_1 = arith.constant 0 : i32
    return %c0_i32, %c0_i32_0 : i32, i32
  }
  func.func @transform_3(%arg0: i32) -> (i32, i32) {
    %c0_i32 = arith.constant 0 : i32
    %c0_i32_0 = arith.constant 0 : i32
    return %arg0, %c0_i32 : i32, i32
  }
}

</mosaic_0001>

<bundles_post_ra>
// kernel: tpu_custom_call.1
= control target key start
LH: loop header
LB: loop body
LE: loop exit
PB: predicated region body
PF: predicated region fallthrough
CT: control target
= control target key end

     0   :  { %8 = vsyncpa [#allocation3], 0  ;;  %s647_s0 = inlined_call_operand.vmem [shape: f32[16,1], index: 0, kind: input, shape index: {}]   ;;  %s648_s1 = inlined_call_operand.vmem [shape: f32[1,128], index: 1, kind: input, shape index: {}]   ;;  %s649_s2 = inlined_call_operand.vmem [shape: f32[1,128], index: 2, kind: input, shape index: {}]   ;;  %s650_s3 = inlined_call_operand.hbm [shape: f32[16,128], index: 3, kind: output, shape index: {}]  }
   0x1   :  { %10 = vsyncpa [#allocation3 + $0x1], 0  ;;  %s527_s12 = smov 0   ;;  %s529_s13 = smov 0  }
   0x2   :  { %s531_s14 = smov 0   ;;  %s533_s15 = smov 0  }
   0x3 LB: > { %s548_s16 = sadd.s32 4294967295, %s497_s15   ;;  %s366_s17 = sadd.s32 4294967294, %s497_s15   ;;  %s497_s15 = sphi %s533_s15, %s656_s15   ;;  %s493_s14 = sphi %s531_s14, %s655_s14   ;;  %s489_s13 = sphi %s529_s13, %s654_s13   ;;  %s485_s12 = sphi %s527_s12, %s653_s12  }
   0x4   : > { %s552_s18 = sadd.s32 1, %s497_s15   ;;  %s91_s19 = sadd.s32 1, %s493_s14 }
   0x5   : > { %s88_s20 = ssub.s32 %s497_s15, %s552_s18  ;;  %p101_p0 = scmp.ne.s32.totalorder %s493_s14, %s489_s13 }
   0x6   : > { %p89_p1 = scmp.eq.s32.totalorder %s88_s20, 0  ;;  %p102_p2 = scmp.eq.s32.totalorder %s548_s16, 1 }
   0x7   : > { %p107_p3 = scmp.ne.s32.totalorder %s489_s13, %s485_s12  ;;  %p108_p4 = scmp.eq.s32.totalorder %s366_s17, 1 }
   0x8   : > { %s563_s21 = scalar_select %p89_p1, %s493_s14, %s91_s19  }
   0x9   : > { %p565_p5 = por %p102_p2, %p101_p0  ;;  %p569_p6 = por %p108_p4, %p107_p3 }
   0xa   : > { %p369_p7 = scmp.ge.s32.totalorder %s497_s15, 1  ;;  %p139_p8 = scmp.lt.s32.totalorder %s497_s15, 3 }
   0xc   : > { %p140_p9 = pnand %p369_p7, %p139_p8 }
   0xd   : > { %p162_p10 = scmp.lt.s32.totalorder (!%p140_p9), %s548_s16, 1  ;;  %s159_s6 = sand.u32 (!%p140_p9), 1, %s489_s13  }
   0xe   : > { %143 = sbr.rel (%p140_p9) target bundleno = 247 (0xf7), region = 32  ;;  %s370_s7 = sshll.u32 (!%p140_p9), %s159_s6, 3 }
   0xf   : > { %s379_s8 = sshll.u32 (!%p140_p9), %s548_s16, 7  ;;  %s161_s9 = scalar_lea.vmem (!%p140_p9), [#allocation2], %s370_s7 }
  0x10   : > { %s307_s10 = sshll.u32 (!%p140_p9), %s161_s9, 4  ;;  %s612_s19 = scalar_lea.hbm (!%p140_p9), %s650_s3, %s379_s8  ;;  %s308_s10 = int_to_ptr.vmem [resolvable:$true] %s307_s10 }
  0x11   : > { %s294_s20 = scalar_lea.sflag (!%p140_p9), [#allocation3], %s159_s6 }
  0x13   : > { %v499_v0 = vmov 0   ;;  %s163_s24 = scalar_select %p162_p10, %s548_s16, 1  ;;  %v372_v2 = vld [vmem:[%s648_s1] ss:$0 sm:$0xff]  ;;  %v500_v17 = vmov 683565275  }
  0x14   : > { %432 = vset.pattern.permute.xlu0 %v499_v0  ;;  %v373_v3 = vld [vmem:[%s649_s2] ss:$0 sm:$0xff]  ;;  %v501_v19 = vmov 2475754826   ;;  %v502_v22 = vmov 2131351028  }
  0x15   : > { %s371_s25 = sshll.u32 %s163_s24, 3  ;;  %v503_v25 = vmov 2102212464   ;;  %v504_v28 = vmov 920167782   ;;  %s437_s16 = scalar_lea.vmem %s308_s10, 128 }
  0x16   : > { %s165_s28 = scalar_lea.vmem %s647_s0, %s371_s25  ;;  %v505_v31 = vmov 1326507024   ;;  %p438_p11 = scmp.ne.s32.totalorder %s308_s10, %s437_s16 }
  0x17   : > { %v166_v1 = vld [vmem:[%s165_s28] sm:$0xff]  ;;  %s506_s24 = smov [#allocation2]  }
  0x18   : > { %170 = vperm.xlu0 %432, %v166_v1   ;;  %p439_p12 = pnand %p438_p11, %p565_p5  ;;  %s441_s25 = sshll.u32 %s506_s24, 4  ;;  %s442_s25 = int_to_ptr.vmem [resolvable:$false] %s441_s25 }
  0x19   : > { %s443_s26 = scalar_lea.vmem %s442_s25, 256  ;;  %p444_p0 = scmp.lt.s32.totalorder %s308_s10, %s442_s25 }
  0x1a   : > { %p440_p13 = pneg %p439_p12  ;;  %p445_p1 = scmp.lt.s32.totalorder %s443_s26, %s437_s16 }
  0x1c   : > { %p446_p2 = por %p445_p1, %p444_p0 }
  0x1e   : > { %p447_p3 = pnand %p446_p2, %p440_p13 }
  0x93   : > { %v171_v4 = vpop.permute.xlu0 %170 }
  0x94   : > { %v179_v5 = vmul.f32 %v372_v2, %v171_v4 }
  0x96   : > { %v586_v6 = vadd.f32 %v373_v3, %v179_v5 }
  0x98   : > { %v191_v7 = vand.u32 2139095040, %v586_v6  ;;  %v188_v11 = vand.u32 2147483647, %v586_v6  ;;  %vm190_vm7 = vcmp.lt.s32.totalorder %v586_v6, 0  ;;  %vm280_vm12 = vweird.f32 %v586_v6 }
  0x9a   : > { %v192_v8 = vshrl.u32 %v191_v7, 23  ;;  %v195_v14 = vand.u32 8388607, %v188_v11  ;;  %vm189_vm8 = vcmp.le.f32.partialorder %v188_v11, 0.7853982 }
  0x9c   : > { %v374_v9 = vadd.s32 4294967169, %v192_v8  ;;  %v196_v33 = vor.u32 8388608, %v195_v14 }
  0x9e   : > { %v198_v10 = vadd.s32 1, %v374_v9  ;;  %v236_v47 = vshll.u32 %v196_v33, 8 }
  0xa0   : > { %vm199_vm0 = vcmp.gt.s32.totalorder %v198_v10, 0 }
  0xa1   : > { %v200_v12 = vsel %vm199_vm0, %v198_v10, 0 }
  0xa2   : > { %v202_v13 = vand.u32 31, %v200_v12  ;;  %v201_v16 = vshrl.u32 %v200_v12, 5 }
  0xa4   : > { %v203_v15 = vsub.s32 32, %v202_v13  ;;  %v205_v18 = vshll.u32 %v500_v17, %v202_v13  ;;  %v208_v20 = vshll.u32 %v501_v19, %v202_v13  ;;  %v211_v24 = vshll.u32 %v502_v22, %v202_v13 }
  0xa5   : > { %v214_v27 = vshll.u32 %v503_v25, %v202_v13  ;;  %v217_v30 = vshll.u32 %v504_v28, %v202_v13  ;;  %vm220_vm1 = vcmp.lt.s32.totalorder %v201_v16, 1  ;;  %vm223_vm2 = vcmp.lt.s32.totalorder %v201_v16, 4 }
  0xa6   : > { %v206_v21 = vshrl.u32 %v501_v19, %v203_v15  ;;  %v209_v23 = vshrl.u32 %v502_v22, %v203_v15  ;;  %v212_v26 = vshrl.u32 %v503_v25, %v203_v15  ;;  %v215_v29 = vshrl.u32 %v504_v28, %v203_v15 }
  0xa7   : > { %v218_v32 = vshrl.u32 %v505_v31, %v203_v15  ;;  %v204_v42 = vshrl.u32 %v500_v17, %v203_v15  ;;  %vm222_vm3 = vcmp.lt.s32.totalorder %v201_v16, 3  ;;  %vm221_vm4 = vcmp.lt.s32.totalorder %v201_v16, 2 }
  0xa8   : > { %v207_v34 = vor.u32 %v206_v21, %v205_v18  ;;  %v210_v35 = vor.u32 %v209_v23, %v208_v20  ;;  %v213_v36 = vor.u32 %v212_v26, %v211_v24  ;;  %v216_v37 = vor.u32 %v215_v29, %v214_v27 }
  0xa9   : > { %v219_v38 = vor.u32 %v218_v32, %v217_v30 }
  0xaa   : > { %v225_v39 = vsel %vm223_vm2, %v213_v36, 2102212464  ;;  %v228_v40 = vsel %vm220_vm1, %v207_v34, %v210_v35  ;;  %v232_v41 = vsel %vm220_vm1, %v210_v35, %v213_v36  ;;  %v229_v43 = vsel %vm223_vm2, %v216_v37, 920167782 }
  0xab   : > { %v233_v44 = vsel %vm223_vm2, %v219_v38, 1326507024  ;;  %v230_v45 = vsel %vm222_vm3, %v213_v36, %v229_v43  ;;  %v224_v48 = vsel %vm220_vm1, %v204_v42, %v207_v34  ;;  %v226_v49 = vsel %vm222_vm3, %v210_v35, %v225_v39 }
  0xac   : > { %v234_v46 = vsel %vm222_vm3, %v216_v37, %v233_v44  ;;  %v231_v50 = vsel %vm221_vm4, %v228_v40, %v230_v45  ;;  %v227_v56 = vsel %vm221_vm4, %v224_v48, %v226_v49 }
  0xad   : > { %v235_v51 = vsel %vm221_vm4, %v232_v41, %v234_v46  ;;  %v595_v54 = vmul.u32.u64.low %v236_v47, %v231_v50  ;;  %v596_v55 = vmul.u32.u64.high %v236_v47, %v231_v50, %v595_v54  ;;  %v243_v58 = vmul.u32 %v236_v47, %v227_v56 }
  0xae   : > { %v592_v52 = vmul.u32.u64.low %v236_v47, %v235_v51  ;;  %v593_v53 = vmul.u32.u64.high %v236_v47, %v235_v51, %v592_v52 }
  0xaf   : > { %v246_v57 = vadd.s32 1, %v596_v55 }
  0xb0   : > { %vm245_vm5 = vc.u32 %v593_v53, %v595_v54  ;;  %v244_v7 = vadd.s32 %v595_v54, %v593_v53 }
  0xb1   : > { %v247_v59 = vsel %vm245_vm5, %v246_v57, %v596_v55 }
  0xb2   : > { %v248_v60 = vadd.s32 %v247_v59, %v243_v58 }
  0xb4   : > { %v249_v61 = vadd.s32 536870912, %v248_v60 }
  0xb6   : > { %v250_v62 = vshrl.u32 %v249_v61, 30 }
  0xb8   : > { %v251_v63 = vshll.u32 %v250_v62, 30  ;;  %v274_v21 = vsub.s32 4, %v250_v62 }
  0xba   : > { %v252_v0 = vsub.s32 %v248_v60, %v251_v63  ;;  %v275_v24 = vsel %vm190_vm7, %v274_v21, %v250_v62 }
  0xbb   : > { %v277_v25 = vsel %vm189_vm8, 0, %v275_v24 }
  0xbc   : > { %v254_v1 = vsub.s32 0, %v252_v0  ;;  %v281_v26 = vadd.s32 3, %v277_v25 }
  0xbe   : > { %v375_v2 = vmin.u32 %v254_v1, %v252_v0  ;;  %v282_v27 = vand.u32 3, %v281_v26 }
  0xc0   : > { %v256_v3 = vclz %v375_v2  ;;  %vm287_vm9 = vcmp.eq.s32.totalorder %v282_v27, 2  ;;  %vm284_vm10 = vcmp.eq.s32.totalorder %v282_v27, 0  ;;  %vm283_vm11 = vcmp.lt.s32.totalorder %v282_v27, 2 }
  0xc2   : > { %v376_v4 = vadd.s32 4294967294, %v256_v3 }
  0xc4   : > { %vm377_vm6 = vcmp.lt.s32.totalorder %v376_v4, 0 }
  0xc5   : > { %v259_v5 = vsel %vm377_vm6, 0, %v376_v4 }
  0xc6   : > { %v260_v8 = vsub.s32 32, %v259_v5  ;;  %v264_v9 = vsub.s32 4294967266, %v259_v5  ;;  %v261_v10 = vshll.u32 %v252_v0, %v259_v5 }
  0xc8   : > { %v262_v12 = vshrl.u32 %v244_v7, %v260_v8  ;;  %v265_v13 = vadd.s32 127, %v264_v9 }
  0xca   : > { %v263_v14 = vor.u32 %v262_v12, %v261_v10  ;;  %v266_v15 = vshll.u32 %v265_v13, 23 }
  0xcc   : > { %v267_v16 = vor.u32 4788187, %v266_v15  ;;  %v270_v18 = vcvt.s32.f32 %v263_v14 }
  0xce   : > { %v268_v17 = vand.u32 2147483647, %v267_v16 }
  0xd0   : > { %v271_v19 = vmul.f32 %v270_v18, %v268_v17 }
  0xd2   : > { %v272_v20 = vxor.u32 2147483648, %v271_v19 }
  0xd4   : > { %v273_v22 = vsel %vm190_vm7, %v272_v20, %v271_v19 }
  0xd5   : > { %v276_v23 = vsel %vm189_vm8, %v586_v6, %v273_v22 }
  0xd6   : > { %433 = vcosq.f32 %v276_v23 }
  0xd7   : > { %435 = vsinq.f32 %v276_v23 }
  0xe3   : > { %v434_v28 = vpop.eup %433 }
  0xe4   : > { %v436_v29 = vpop.eup %435  ;;  %v288_v30 = vxor.u32 2147483648, %v434_v28 }
  0xe5   : > { %v285_v31 = vxor.u32 2147483648, %v436_v29 }
  0xe6   : > { %v289_v11 = vsel %vm287_vm9, %v288_v30, %v436_v29 }
  0xe7   : > { %v286_v32 = vsel %vm284_vm10, %v434_v28, %v285_v31 }
  0xe8   : > { %v290_v33 = vsel %vm283_vm11, %v286_v32, %v289_v11 }
  0xe9   : > { %v291_v34 = vsel %vm280_vm12, nan, %v290_v33 }
  0xea   : > { %292 = vst [vmem:[%s161_s9] sm:$0xff] %v291_v34 }
  0xeb   : > { %450 = shalt.err (!%p447_p3)
}
  0xec   : > { %s451_s27 = scalar_lea.hbm %s612_s19, 128  ;;  %s455_s30 = scalar_lea.hbm %s650_s3, 256 }
  0xed   : > { %p452_p4 = scmp.ne.s32.totalorder %s612_s19, %s451_s27  ;;  %p456_p9 = scmp.lt.s32.totalorder %s612_s19, %s650_s3 }
  0xee   : > { %p457_p10 = scmp.lt.s32.totalorder %s455_s30, %s451_s27 }
  0xef   : > { %p453_p7 = pnand %p452_p4, %p565_p5 }
  0xf0   : > { %p458_p11 = por %p457_p10, %p456_p9 }
  0xf1   : > { %p454_p8 = pneg %p453_p7 }
  0xf3   : > { %p459_p12 = pnand %p458_p11, %p454_p8 }
  0xf5   : > { %462 = shalt.err (!%p459_p12)
}
  0xf6   : > { %386 = dma.vmem_to_hbm [thread:$0]  (%p565_p5), %s308_s10, 128, %s612_s19, %s294_s20  }
  0xf7 PF: > { %p392_p13 = scmp.ge.s32.totalorder %s497_s15, 2  ;;  %s319_s6 = sand.u32 1, %s485_s12  }
  0xf8   : > { %s320_s7 = scalar_lea.sflag [#allocation3], %s319_s6 }
  0xf9   : > { %p389_p0 = pnand %p392_p13, %p569_p6 }
  0xfb   : > { %p390_p1 = pneg %p389_p0 }
  0xfd   : > { %480 = dma.done.wait (%p390_p1), %s320_s7, 128  }
  0xfe   : > { %482 = vsyncadd (%p390_p1), %s320_s7, 4294967168  ;;  %p13_p2 = scmp.ge.s32.totalorder %s552_s18, 4   ;;  %s653_s12 = smov %s489_s13 }
  0xff   : > { %s654_s13 = smov %s493_s14  ;;  %s655_s14 = smov %s563_s21 }
 0x100   : > { %s656_s15 = smov %s552_s18  ;;  %15 = sbr.rel (!%p13_p2) target bundleno = 3 (0x3), region = 67 }
 0x105   :  { %325 = vsyncpa [#allocation3], 1 }
 0x106   :  { %327 = vsyncpa [#allocation3 + $0x1], 1 }

</bundles_post_ra>
